<compile_context>
chip_gen: v7x
topology: tpu7x:2x2x1
jax: 0.10.0
libtpu: 0.0.40
codegen_flags: <defaults>
</compile_context>

<pallas_src>
import jax
import jax.numpy as jnp
from jax.experimental import pallas as pl
from jax.experimental.pallas import tpu as pltpu


def _single_tensorcore_chip():
    """True for 1-TC chips (v5e / v6e): fold the batch into one grid step."""
    try:
        kind = jax.devices()[0].device_kind.lower()
    except Exception:
        return False
    return any(t in kind for t in ("v5e", "v5 lite", "v5litepod", "v6e", "v6 lite"))


def model_forward(x, w1, b1, w2, b2, other):
    """x: (N,Cin,H,W) NCHW f32; returns conv2(conv1(x)) + other, NCHW f32."""
    n, cin, h, w = x.shape
    cmid = w1.shape[0]
    cout = w2.shape[0]
    h1, w1o = h + 2, w + 2                 # output spatial (both convs pad=1)
    wp = w1o + 2                           # padded plane width (effective pad=2)
    m_out = h1 * wp                        # wide output (2 garbage cols per row)
    m_pad = -(-m_out // 128) * 128         # lane-dense store width
    c_in_p = -(-cin // 8) * 8              # channels padded to one sublane group
    # plane height: largest shift (2*wp+2) + m_pad must stay in-bounds
    hpe = max(h + 4, -(-(2 * wp + 2 + m_pad) // wp))
    L = hpe * wp

    # ---- fold conv1 (1x1) into conv2 (3x3) --------------------------------
    w1m = w1.reshape(cmid, cin)                                   # (Cmid, Cin)
    w_eff = jnp.einsum('omij,mc->oijc', w2, w1m)                  # (Cout,3,3,Cin)
    w_stack = jnp.pad(w_eff, ((0, 0), (0, 0), (0, 0), (0, c_in_p - cin))
                      ).reshape(cout, 9 * c_in_p)                 # (Cout, 72)

    # ---- constant bias plane: conv2 over the b1-valued conv1 ring, + b2 ----
    wb = jnp.einsum('omij,m->oij', w2, b1)                        # (Cout,3,3)
    mask1 = jnp.zeros((h + 4, w + 4), jnp.float32).at[1:h + 3, 1:w + 3].set(1.0)
    bias_sp = sum(wb[:, di, dj][:, None, None]
                  * mask1[di:di + h1, dj:dj + w1o][None]
                  for di in range(3) for dj in range(3))          # (Cout,h1,w1o)
    add_full = other + bias_sp[None] + b2[None, :, None, None]    # (N,Cout,h1,w1o)
    other_w = jnp.pad(add_full, ((0, 0), (0, 0), (0, 0), (0, wp - w1o))
                      ).reshape(n, cout, m_out)
    other_w = jnp.pad(other_w, ((0, 0), (0, 0), (0, m_pad - m_out)))

    # ---- input: x placed at [2:2+h, 2:2+w] of a zero (hpe, wp) plane -------
    xplane = jnp.pad(x, ((0, 0), (0, c_in_p - cin),
                         (2, hpe - 2 - h), (2, wp - 2 - w))).reshape(n, c_in_p, L)

    bn = n if _single_tensorcore_chip() else 1        # batches per grid step
    grid = (n // bn,)

    def kernel(x_ref, w_ref, oth_ref, o_ref):
        wmat = w_ref[...]                              # (Cout, 9*c_in_p)
        for b in range(bn):                            # static unroll
            plane = x_ref[b]                           # (c_in_p, L)
            rhs = jnp.concatenate(
                [plane[:, (kk // 3) * wp + (kk % 3):
                       (kk // 3) * wp + (kk % 3) + m_pad]
                 for kk in range(9)], axis=0)          # (9*c_in_p, m_pad)
            o_ref[b] = oth_ref[b] + jnp.dot(
                wmat, rhs, preferred_element_type=jnp.float32)

    flops = 2 * n * cout * (9 * c_in_p) * m_pad
    bytes_accessed = 4 * (xplane.size + w_stack.size + other_w.size
                          + n * cout * m_pad)

    out = pl.pallas_call(
        kernel,
        out_shape=jax.ShapeDtypeStruct((n, cout, m_pad), jnp.float32),
        grid_spec=pltpu.PrefetchScalarGridSpec(
            num_scalar_prefetch=0,
            grid=grid,
            in_specs=[
                pl.BlockSpec((bn, c_in_p, L), lambda i: (i, 0, 0)),       # x plane
                pl.BlockSpec((cout, 9 * c_in_p), lambda i: (0, 0)),       # fused W
                pl.BlockSpec((bn, cout, m_pad), lambda i: (i, 0, 0)),     # other+bias
            ],
            out_specs=pl.BlockSpec((bn, cout, m_pad), lambda i: (i, 0, 0)),
        ),
        compiler_params=pltpu.CompilerParams(
            dimension_semantics=("parallel",)),
        cost_estimate=pl.CostEstimate(flops=flops, transcendentals=0,
                                      bytes_accessed=bytes_accessed),
    )(xplane, w_stack, other_w)

    # drop the padded lanes and the 2 garbage columns per row; already NCHW
    return out[:, :, :m_out].reshape(n, cout, h1, wp)[:, :, :, :w1o]


def _reference(x, w1, b1, w2, b2, other):
    dn1 = jax.lax.conv_dimension_numbers(x.shape, w1.shape, ("NCHW", "OIHW", "NCHW"))
    v1 = jax.lax.conv_general_dilated(x, w1, (1, 1), [(1, 1), (1, 1)],
                                      dimension_numbers=dn1) + b1.reshape(1, -1, 1, 1)
    dn2 = jax.lax.conv_dimension_numbers(v1.shape, w2.shape, ("NCHW", "OIHW", "NCHW"))
    v2 = jax.lax.conv_general_dilated(v1, w2, (1, 1), [(1, 1), (1, 1)],
                                      dimension_numbers=dn2) + b2.reshape(1, -1, 1, 1)
    return v2 + other


if __name__ == "__main__":
    key = jax.random.PRNGKey(0)
    kx, k1, kb1, k2, kb2, ko = jax.random.split(key, 6)

    N, CIN, H, W = 2, 3, 16, 16
    CMID, COUT = 8, 8

    x = jax.random.normal(kx, (N, CIN, H, W), dtype=jnp.float32)
    w1 = jax.random.normal(k1, (CMID, CIN, 1, 1), dtype=jnp.float32) * 0.3
    b1 = jax.random.normal(kb1, (CMID,), dtype=jnp.float32) * 0.1
    w2 = jax.random.normal(k2, (COUT, CMID, 3, 3), dtype=jnp.float32) * 0.2
    b2 = jax.random.normal(kb2, (COUT,), dtype=jnp.float32) * 0.1
    # TODO(synk): torch's `other=None -> torch.randn(v2.shape)` in-forward RNG
    # is not replicated; `other` is drawn here and passed explicitly.
    other = jax.random.normal(ko, (N, COUT, H + 2, W + 2), dtype=jnp.float32)

    out = jax.jit(model_forward)(x, w1, b1, w2, b2, other)
    out = jax.block_until_ready(out)

    ref = _reference(x, w1, b1, w2, b2, other)
    assert out.shape == (N, COUT, H + 2, W + 2)
    assert jnp.allclose(out, ref, atol=5e-4, rtol=5e-4), \
        float(jnp.max(jnp.abs(out - ref)))

    print("KERNEL_OK")
</pallas_src>

<mosaic_0001>
module attributes {stable_mosaic.version = 11 : i64} {
  func.func @kernel(%arg0: i32, %arg1: memref<1x8x440xf32, #tpu.memory_space<vmem>>, %arg2: memref<8x72xf32, #tpu.memory_space<vmem>>, %arg3: memref<1x8x384xf32, #tpu.memory_space<vmem>>, %arg4: memref<1x8x384xf32, #tpu.memory_space<vmem>>) attributes {dimension_semantics = [#tpu.dimension_semantics<parallel>], iteration_bounds = array<i64: 2>, scalar_prefetch = 0 : i64, scratch_operands = 0 : i64, tpu.core_type = #tpu.core_type<tc>, window_params = [{transform_indices = @transform_0, window_bounds = array<i64: 1, 8, 440>}, {pipeline_mode = #tpu.pipeline_mode<synchronous>, transform_indices = @transform_1, window_bounds = array<i64: 8, 72>}, {transform_indices = @transform_2, window_bounds = array<i64: 1, 8, 384>}, {transform_indices = @transform_3, window_bounds = array<i64: 1, 8, 384>}]} {
    %c0 = arith.constant 0 : index
    %c0_0 = arith.constant 0 : index
    %0 = vector.load %arg2[%c0, %c0_0] : memref<8x72xf32, #tpu.memory_space<vmem>>, vector<8x72xf32>
    %c0_1 = arith.constant 0 : index
    %c0_2 = arith.constant 0 : index
    %c0_3 = arith.constant 0 : index
    %1 = vector.load %arg1[%c0_1, %c0_2, %c0_3] : memref<1x8x440xf32, #tpu.memory_space<vmem>>, vector<1x8x440xf32>
    %2 = vector.shape_cast %1 : vector<1x8x440xf32> to vector<8x440xf32>
    %3 = vector.extract_strided_slice %2 {offsets = [0, 0], sizes = [8, 384], strides = [1, 1]} : vector<8x440xf32> to vector<8x384xf32>
    %4 = vector.extract_strided_slice %2 {offsets = [0, 1], sizes = [8, 384], strides = [1, 1]} : vector<8x440xf32> to vector<8x384xf32>
    %5 = vector.extract_strided_slice %2 {offsets = [0, 2], sizes = [8, 384], strides = [1, 1]} : vector<8x440xf32> to vector<8x384xf32>
    %6 = vector.extract_strided_slice %2 {offsets = [0, 20], sizes = [8, 384], strides = [1, 1]} : vector<8x440xf32> to vector<8x384xf32>
    %7 = vector.extract_strided_slice %2 {offsets = [0, 21], sizes = [8, 384], strides = [1, 1]} : vector<8x440xf32> to vector<8x384xf32>
    %8 = vector.extract_strided_slice %2 {offsets = [0, 22], sizes = [8, 384], strides = [1, 1]} : vector<8x440xf32> to vector<8x384xf32>
    %9 = vector.extract_strided_slice %2 {offsets = [0, 40], sizes = [8, 384], strides = [1, 1]} : vector<8x440xf32> to vector<8x384xf32>
    %10 = vector.extract_strided_slice %2 {offsets = [0, 41], sizes = [8, 384], strides = [1, 1]} : vector<8x440xf32> to vector<8x384xf32>
    %11 = vector.extract_strided_slice %2 {offsets = [0, 42], sizes = [8, 384], strides = [1, 1]} : vector<8x440xf32> to vector<8x384xf32>
    %12 = tpu.concatenate %3, %4, %5, %6, %7, %8, %9, %10, %11 in 0 : vector<8x384xf32>, vector<8x384xf32>, vector<8x384xf32>, vector<8x384xf32>, vector<8x384xf32>, vector<8x384xf32>, vector<8x384xf32>, vector<8x384xf32>, vector<8x384xf32> -> vector<72x384xf32>
    %c0_4 = arith.constant 0 : index
    %c0_5 = arith.constant 0 : index
    %c0_6 = arith.constant 0 : index
    %13 = vector.load %arg3[%c0_4, %c0_5, %c0_6] : memref<1x8x384xf32, #tpu.memory_space<vmem>>, vector<1x8x384xf32>
    %14 = vector.shape_cast %13 : vector<1x8x384xf32> to vector<8x384xf32>
    %cst = arith.constant dense<0.000000e+00> : vector<8x384xf32>
    %15 = tpu.matmul %0, %12, %cst {dimension_numbers = #tpu.dot_dimension_numbers<[1], [0], [0], [1], [0, 0, 1, 1], [], []>} : vector<8x72xf32>, vector<72x384xf32>, vector<8x384xf32> -> vector<8x384xf32>
    %16 = arith.addf %14, %15 : vector<8x384xf32>
    %c0_7 = arith.constant 0 : index
    %c0_8 = arith.constant 0 : index
    %c0_9 = arith.constant 0 : index
    %17 = vector.load %arg4[%c0_7, %c0_8, %c0_9] : memref<1x8x384xf32, #tpu.memory_space<vmem>>, vector<1x8x384xf32>
    %18 = vector.shape_cast %17 : vector<1x8x384xf32> to vector<8x384xf32>
    %19 = vector.shape_cast %16 : vector<8x384xf32> to vector<1x8x384xf32>
    tpu.vector_store %arg4[%c0_7, %c0_8, %c0_9], %19 {strides = array<i32>} : memref<1x8x384xf32, #tpu.memory_space<vmem>>, vector<1x8x384xf32>,
    return
  }
  func.func @transform_0(%arg0: i32) -> (i32, i32, i32) {
    %c0_i32 = arith.constant 0 : i32
    %c0_i32_0 = arith.constant 0 : i32
    %c0_i32_1 = arith.constant 0 : i32
    return %arg0, %c0_i32, %c0_i32_0 : i32, i32, i32
  }
  func.func @transform_1(%arg0: i32) -> (i32, i32) {
    %c0_i32 = arith.constant 0 : i32
    %c0_i32_0 = arith.constant 0 : i32
    %c0_i32_1 = arith.constant 0 : i32
    return %c0_i32, %c0_i32_0 : i32, i32
  }
  func.func @transform_2(%arg0: i32) -> (i32, i32, i32) {
    %c0_i32 = arith.constant 0 : i32
    %c0_i32_0 = arith.constant 0 : i32
    %c0_i32_1 = arith.constant 0 : i32
    return %arg0, %c0_i32, %c0_i32_0 : i32, i32, i32
  }
  func.func @transform_3(%arg0: i32) -> (i32, i32, i32) {
    %c0_i32 = arith.constant 0 : i32
    %c0_i32_0 = arith.constant 0 : i32
    %c0_i32_1 = arith.constant 0 : i32
    return %arg0, %c0_i32, %c0_i32_0 : i32, i32, i32
  }
}

</mosaic_0001>

<bundles_post_ra>
// kernel: model_forward.1
= control target key start
LH: loop header
LB: loop body
LE: loop exit
PB: predicated region body
PF: predicated region fallthrough
CT: control target
= control target key end

     0   :  { %s743_s12 = smov 0   ;;  %s811_s0 = inlined_call_operand.vmem [shape: f32[2,8,440], index: 0, kind: input, shape index: {}]   ;;  %s812_s1 = inlined_call_operand.vmem [shape: f32[8,72], index: 1, kind: input, shape index: {}]   ;;  %s813_s2 = inlined_call_operand.vmem [shape: f32[2,8,384], index: 2, kind: input, shape index: {}]   ;;  %s814_s3 = inlined_call_operand.vmem [shape: f32[2,8,384], index: 3, kind: output, shape index: {}]  }
   0x1 LB: > { %s541_s13 = sadd.s32 4294967295, %s710_s12   ;;  %p545_p0 = scmp.ge.s32.totalorder %s710_s12, 1  ;;  %s710_s12 = sphi %s743_s12, %s13_s12  }
   0x2   : > { %p147_p1 = scmp.lt.s32.totalorder %s710_s12, 3 }
   0x4   : > { %p148_p2 = pnand %p545_p0, %p147_p1 }
   0x5   : > { %p176_p3 = scmp.lt.s32.totalorder (!%p148_p2), %s541_s13, 1  ;;  %v712_v0 = vmov (!%p148_p2), 0.0|0.0   ;;  %s713_s18 = smov (!%p148_p2), 126   ;;  %v718_v7 = vmov (!%p148_p2), 0.0   ;;  %vm721_vm0 = vmmov (!%p148_p2), 0   ;;  %vm208_vm1 = vcmask (!%p148_p2), 1039360  }
   0x6   : > { %151 = sbr.rel (%p148_p2) target bundleno = 384 (0x180), region = 32  ;;  %602 = vmatprep.subr.bf16.mxu1 (!%p148_p2), %v712_v0  ;;  %s714_s19 = smov (!%p148_p2), 127   ;;  %391 = vmatprep.mubr.f32.mxu0 (!%p148_p2), %v718_v7  ;;  %vm223_vm2 = vcmask (!%p148_p2), 1031168   ;;  %vm238_vm3 = vcmask (!%p148_p2), 883712   ;;  %vm253_vm4 = vcmask (!%p148_p2), 875520   ;;  %vm268_vm5 = vcmask (!%p148_p2), 867328  }
   0x7   : > { %s715_s20 = smov (!%p148_p2), 108   ;;  %s716_s21 = smov (!%p148_p2), 106   ;;  %583 = vmatprep.mubr.msk.f32.mxu1 (!%p148_p2), %vm721_vm0, %v718_v7  ;;  %vm283_vm6 = vcmask (!%p148_p2), 719872   ;;  %vm298_vm7 = vcmask (!%p148_p2), 711680   ;;  %vm313_vm8 = vcmask (!%p148_p2), 703488   ;;  %vm323_vm9 = vcmask (!%p148_p2), 588800  }
   0x8   : > { %s717_s22 = smov (!%p148_p2), 107   ;;  %s719_s23 = smov (!%p148_p2), 87  }
   0x9   : > { %s720_s24 = smov (!%p148_p2), 88   ;;  %s722_s25 = smov (!%p148_p2), 86  }
   0xd   : > { %s816_s13 = smov (!%p176_p3, %s541_s13), 1 }
   0xe   : > { %s554_s14 = sshll.u32 %s816_s13, 5  ;;  %s614_s28 = smul.u32 24, %s816_s13 }
   0xf   : > { %s180_s17 = scalar_lea.vmem %s811_s0, %s554_s14 }
  0x10   : > { %v193_v1 = vld [vmem:[%s180_s17 + $0x8] sm:$0xff]  ;;  %v758_v2 = vld [vmem:[%s180_s17 + $0x10] sm:$0xff]  ;;  %v760_v3 = vld [vmem:[%s180_s17] sm:$0xff]  ;;  %s185_s4 = scalar_lea.vmem %s813_s2, %s614_s28  ;;  %s190_s7 = scalar_lea.vmem %s814_s3, %s614_s28 }
  0x11   : > { %v644_v4 = vpack.i.bf16 %v758_v2, %v193_v1  ;;  %v195_v5 = vld [vmem:[%s180_s17 + $0x18] sm:$0xff] }
  0x12   : > { %v639_v6 = vpack.i.bf16 %v195_v5, %v760_v3 }
  0x13   : > { %645 = vrot.lane.b32.xlu1 %v644_v4, %s713_s18  ;;  %635 = vrot.lane.b32.xlu0 %v644_v4, %s714_s19 }
  0x17   : > { %650 = vrot.lane.b32.xlu1 %v644_v4, %s715_s20  ;;  %640 = vrot.lane.b32.xlu0 %v639_v6, %s714_s19 }
  0x1b   : > { %660 = vrot.lane.b32.xlu1 %v639_v6, %s715_s20  ;;  %655 = vrot.lane.b32.xlu0 %v639_v6, %s713_s18 }
  0x1f   : > { %670 = vrot.lane.b32.xlu1 %v644_v4, %s716_s21  ;;  %665 = vrot.lane.b32.xlu0 %v644_v4, %s717_s22 }
  0x23   : > { %680 = vrot.lane.b32.xlu1 %v639_v6, %s716_s21  ;;  %675 = vrot.lane.b32.xlu0 %v639_v6, %s717_s22 }
  0x27   : > { %690 = vrot.lane.b32.xlu1 %v644_v4, %s719_s23  ;;  %685 = vrot.lane.b32.xlu0 %v644_v4, %s720_s24 }
  0x2b   : > { %700 = vrot.lane.b32.xlu1 %v639_v6, %s719_s23  ;;  %695 = vrot.lane.b32.xlu0 %v639_v6, %s720_s24 }
  0x2f   : > { %309 = vrot.lane.b32.xlu1 %v758_v2, %s722_s25  ;;  %307 = vrot.lane.b32.xlu0 %v193_v1, %s722_s25 }
  0x33   : > { %311 = vrot.lane.b32.xlu1 %v195_v5, %s722_s25  ;;  %305 = vrot.lane.b32.xlu0 %v760_v3, %s722_s25 }
  0x85   : > { %v646_v8 = vpop.permute.xlu1 %645  ;;  %v636_v9 = vpop.permute.xlu0 %635 }
  0x86   : > { %v638_v10 = vunpack.i.h.bf16 %v636_v9  ;;  %v637_v11 = vunpack.i.l.bf16 %v636_v9  ;;  %v648_v12 = vunpack.i.h.bf16 %v646_v8  ;;  %v647_v13 = vunpack.i.l.bf16 %v646_v8 }
  0x88   : > { %v210_v14 = vsel %vm208_vm1, %v637_v11, %v638_v10  ;;  %v225_v24 = vsel %vm223_vm2, %v647_v13, %v648_v12 }
  0x89   : > { %v651_v15 = vpop.permute.xlu1 %650  ;;  %v641_v16 = vpop.permute.xlu0 %640  ;;  %v586_v17 = vpack.c.bf16 %v210_v14, %v193_v1 }
  0x8a   : > { %v653_v18 = vunpack.i.h.bf16 %v651_v15  ;;  %v652_v19 = vunpack.i.l.bf16 %v651_v15  ;;  %v643_v20 = vunpack.i.h.bf16 %v641_v16  ;;  %v642_v21 = vunpack.i.l.bf16 %v641_v16 }
  0x8b   : > { %587 = vmatprep.subr.bf16.mxu0 %v586_v17 }
  0x8c   : > { %v209_v22 = vsel %vm208_vm1, %v642_v21, %v637_v11  ;;  %v211_v23 = vsel %vm208_vm1, %v638_v10, %v643_v20  ;;  %v240_v25 = vsel %vm238_vm3, %v652_v19, %v653_v18 }
  0x8d   : > { %v661_v26 = vpop.permute.xlu1 %660  ;;  %v656_v27 = vpop.permute.xlu0 %655  ;;  %v588_v28 = vpack.c.bf16 %v209_v22, %v760_v3  ;;  %v603_v29 = vpack.c.bf16 %v211_v23, %v758_v2  ;;  %v590_v30 = vpack.c.bf16 %v240_v25, %v225_v24  ;;  %v191_v25 = vld [vmem:[%s812_s1] sm:$0xff] }
  0x8e   : > { %v663_v31 = vunpack.i.h.bf16 %v661_v26  ;;  %v662_v32 = vunpack.i.l.bf16 %v661_v26  ;;  %v658_v33 = vunpack.i.h.bf16 %v656_v27  ;;  %v657_v34 = vunpack.i.l.bf16 %v656_v27 }
  0x8f   : > { %589 = vmatpush1.bf16.msra.mxu0 %v588_v28  ;;  %604 = vmatpush3.bf16.msra.mxu1 %v603_v29  ;;  %v322_v28 = vld [vmem:[%s185_s4 + $0x10] sm:$0xff]  ;;  %v321_v29 = vld [vmem:[%s185_s4 + $0x8] sm:$0xff] }
  0x90   : > { %591 = vmatprep.subr.bf16.mxu0 %v590_v30  ;;  %605 = vmatprep.subr.bf16.mxu1 %v712_v0  ;;  %v224_v35 = vsel %vm223_vm2, %v657_v34, %v647_v13  ;;  %v239_v36 = vsel %vm238_vm3, %v662_v32, %v652_v19  ;;  %v226_v37 = vsel %vm223_vm2, %v648_v12, %v658_v33 }
  0x91   : > { %v671_v38 = vpop.permute.xlu1 %670  ;;  %v666_v39 = vpop.permute.xlu0 %665  ;;  %v592_v40 = vpack.c.bf16 %v239_v36, %v224_v35  ;;  %v241_v41 = vsel %vm238_vm3, %v653_v18, %v663_v31 }
  0x92   : > { %v673_v42 = vunpack.i.h.bf16 %v671_v38  ;;  %v672_v43 = vunpack.i.l.bf16 %v671_v38  ;;  %v668_v44 = vunpack.i.h.bf16 %v666_v39  ;;  %v667_v45 = vunpack.i.l.bf16 %v666_v39 }
  0x93   : > { %593 = vmatpush1.bf16.msra.mxu0 %v592_v40  ;;  %v606_v46 = vpack.c.bf16 %v241_v41, %v226_v37 }
  0x94   : > { %v255_v47 = vsel %vm253_vm4, %v667_v45, %v668_v44  ;;  %v270_v48 = vsel %vm268_vm5, %v672_v43, %v673_v42 }
  0x95   : > { %607 = vmatpush3.bf16.msra.mxu1 %v606_v46  ;;  %v681_v49 = vpop.permute.xlu1 %680  ;;  %v676_v50 = vpop.permute.xlu0 %675  ;;  %v594_v51 = vpack.c.bf16 %v270_v48, %v255_v47 }
  0x96   : > { %v683_v52 = vunpack.i.h.bf16 %v681_v49  ;;  %v682_v53 = vunpack.i.l.bf16 %v681_v49  ;;  %v678_v54 = vunpack.i.h.bf16 %v676_v50  ;;  %v677_v55 = vunpack.i.l.bf16 %v676_v50  ;;  %608 = vmatprep.subr.bf16.mxu1 %v712_v0 }
  0x97   : > { %595 = vmatprep.subr.bf16.mxu0 %v594_v51 }
  0x98   : > { %v254_v56 = vsel %vm253_vm4, %v677_v55, %v667_v45  ;;  %v269_v57 = vsel %vm268_vm5, %v682_v53, %v672_v43  ;;  %v256_v58 = vsel %vm253_vm4, %v668_v44, %v678_v54  ;;  %v271_v59 = vsel %vm268_vm5, %v673_v42, %v683_v52 }
  0x99   : > { %v691_v60 = vpop.permute.xlu1 %690  ;;  %v686_v61 = vpop.permute.xlu0 %685  ;;  %v596_v62 = vpack.c.bf16 %v269_v57, %v254_v56  ;;  %v609_v63 = vpack.c.bf16 %v271_v59, %v256_v58 }
  0x9a   : > { %v693_v1 = vunpack.i.h.bf16 %v691_v60  ;;  %v692_v2 = vunpack.i.l.bf16 %v691_v60  ;;  %v688_v3 = vunpack.i.h.bf16 %v686_v61  ;;  %v687_v4 = vunpack.i.l.bf16 %v686_v61 }
  0x9b   : > { %597 = vmatpush1.bf16.msra.mxu0 %v596_v62  ;;  %610 = vmatpush3.bf16.msra.mxu1 %v609_v63 }
  0x9c   : > { %v285_v5 = vsel %vm283_vm6, %v687_v4, %v688_v3  ;;  %v300_v6 = vsel %vm298_vm7, %v692_v2, %v693_v1  ;;  %611 = vmatprep.subr.bf16.mxu1 %v712_v0 }
  0x9d   : > { %v701_v8 = vpop.permute.xlu1 %700  ;;  %v696_v9 = vpop.permute.xlu0 %695  ;;  %v598_v10 = vpack.c.bf16 %v300_v6, %v285_v5 }
  0x9e   : > { %v703_v11 = vunpack.i.h.bf16 %v701_v8  ;;  %v702_v12 = vunpack.i.l.bf16 %v701_v8  ;;  %v698_v13 = vunpack.i.h.bf16 %v696_v9  ;;  %v697_v14 = vunpack.i.l.bf16 %v696_v9 }
  0x9f   : > { %599 = vmatprep.subr.bf16.mxu0 %v598_v10 }
  0xa0   : > { %v284_v15 = vsel %vm283_vm6, %v697_v14, %v687_v4  ;;  %v299_v16 = vsel %vm298_vm7, %v702_v12, %v692_v2  ;;  %v286_v17 = vsel %vm283_vm6, %v688_v3, %v698_v13  ;;  %v301_v18 = vsel %vm298_vm7, %v693_v1, %v703_v11 }
  0xa1   : > { %v310_v19 = vpop.permute.xlu1 %309  ;;  %v308_v20 = vpop.permute.xlu0 %307  ;;  %v600_v0 = vpack.c.bf16 %v299_v16, %v284_v15  ;;  %v612_v21 = vpack.c.bf16 %v301_v18, %v286_v17 }
  0xa2   : > { %v315_v22 = vsel %vm313_vm8, %v308_v20, %v310_v19 }
  0xa3   : > { %601 = vmatpush1.bf16.msra.mxu0 %v600_v0  ;;  %613 = vmatpush3.bf16.msra.mxu1 %v612_v21 }
  0xa4   : > { %343 = vmatprep.subr.mxu0 %v315_v22  ;;  %581 = vmatprep.subr.mxu1 %v718_v7  ;;  %v320_v7 = vld [vmem:[%s185_s4] sm:$0xff] }
  0xa5   : > { %v312_v23 = vpop.permute.xlu1 %311  ;;  %v306_v24 = vpop.permute.xlu0 %305 }
  0xa6   : > { %v314_v26 = vsel %vm313_vm8, %v306_v24, %v308_v20  ;;  %v316_v27 = vsel %vm313_vm8, %v310_v19, %v312_v23 }
  0xa7   : > { %344 = vmatpush1.msra.mxu0 %v314_v26  ;;  %582 = vmatpush3.msra.mxu1 %v316_v27 }
  0xa8   : > { %550 = vmatmul.mubr.msk.f32.vlgmr.msra.gmra.mrb[0].mxu0 %vm323_vm9, %v191_v25  ;;  %584 = vmatmul.mubr.msk.f32.vlgmr.msra.gmra.mrb[0].mxu1 %vm323_vm9, %v191_v25 }
 0x17b   : > { %v393_v30 = vpop.f32.mrb[0].mxu0  ;;  %v464_v31 = vpop.f32.mrb[0].mxu1 }
 0x17c   : > { %v468_v32 = vadd.f32 %v393_v30, %v320_v7  ;;  %v470_v33 = vadd.f32 %v464_v31, %v322_v28  ;;  %v395_v34 = vpop.f32.mrb[1].mxu0  ;;  %v585_v35 = vpop.f32.mrb[1].mxu1 }
 0x17d   : > { %v469_v36 = vadd.f32 %v395_v34, %v321_v29 }
 0x17e   : > { %471 = vst [vmem:[%s190_s7] sm:$0xff] %v468_v32  ;;  %473 = vst [vmem:[%s190_s7 + $0x10] sm:$0xff] %v470_v33 }
 0x17f   : > { %472 = vst [vmem:[%s190_s7 + $0x8] sm:$0xff] %v469_v36 }
 0x180 PF: > { %s13_s12 = sadd.s32 1, %s710_s12  }
 0x181   : > { %p10_p4 = scmp.ge.s32.totalorder %s13_s12, 4  }
 0x183   :  { %12 = sbr.rel (!%p10_p4) target bundleno = 1 (0x1), region = 65 }

</bundles_post_ra>
